<compile_context>
chip_gen: v7x
topology: tpu7x:2x2x1
jax: 0.10.0
libtpu: 0.0.40
codegen_flags: <defaults>
</compile_context>

<pallas_src>
import functools

import jax
import jax.numpy as jnp
from jax.experimental import pallas as pl
from jax.experimental.pallas import tpu as pltpu


def _dgc_kernel(sup_ref, x0_ref, w_ref, b_ref, o_ref, xs_ref, *,
                num_supports, max_diffusion_step, F, F_pad, K_pad, N, TB):
    """One batch *block* (TB batch elements) per grid step.

    sup_ref : (num_supports, N, N)     dense diffusion supports (resident)
    x0_ref  : (1, N, TB*F_pad)         concat(inputs, state); col = b*F_pad + f
    w_ref   : (K_pad, O_pad)           fused projection weight, row = m*F + f
    b_ref   : (1, O_pad)               bias (zero padded)
    o_ref   : (1, TB*N, O_pad)         output slab, row = b*N + n
    xs_ref  : (TB*N, K_pad) VMEM       projection slab, row = b*N + n, col = m*F + f
    """
    num_matrices = num_supports * max_diffusion_step + 1

    x0 = x0_ref[0]                                        # (N, TB*F_pad)

    def stash(m, xm):
        # Scatter X_m (batch folded into lanes) into the batch-along-sublanes,
        # densely packed slab.  Row starts b*N are 8-aligned; the lane starts
        # m*F are not 128-aligned -> a few masked vst, accepted for the 5x
        # smaller projection K.
        for b in range(TB):
            xs_ref[b * N:(b + 1) * N, m * F:(m + 1) * F] = (
                xm[:, b * F_pad: b * F_pad + F])

    # Zero the K padding tail once: the matching weight rows are zero, but
    # stale VMEM could hold NaN/Inf bit patterns and 0*Inf = NaN.
    tail = K_pad - num_matrices * F
    if tail > 0:
        xs_ref[:, num_matrices * F:] = jnp.zeros((TB * N, tail), jnp.float32)

    # Matrix 0 is the identity term (x0 itself).
    stash(0, x0)

    if max_diffusion_step > 0:
        def m_idx(s, k):                      # matrix index, matching PyTorch order
            return 1 + s * max_diffusion_step + (k - 1)

        # k = 1 for every support: independent matmuls, issued back to back.
        prev2 = [x0] * num_supports
        prev1 = []
        for s in range(num_supports):
            x1 = jnp.dot(sup_ref[s], x0, preferred_element_type=jnp.float32)
            stash(m_idx(s, 1), x1)
            prev1.append(x1)

        # k = 2..K: interleave the chains so num_supports independent matmuls
        # are always in flight (hides MXU result-pop latency on the serial
        # Chebyshev recurrence).
        for k in range(2, max_diffusion_step + 1):
            nxt = []
            for s in range(num_supports):
                x2 = (2.0 * jnp.dot(sup_ref[s], prev1[s],
                                    preferred_element_type=jnp.float32)
                      - prev2[s])
                stash(m_idx(s, k), x2)
                nxt.append(x2)
            prev2, prev1 = prev1, nxt

    # Single fused projection GEMM for the whole batch block; bias broadcast
    # exactly once (no per-batch broadcast_in_dim in an unrolled loop).
    o_ref[0] = (jnp.dot(xs_ref[...], w_ref[...],
                        preferred_element_type=jnp.float32)
                + b_ref[...])


def diffusion_graph_conv(supports, inputs, state, weight, bias, *,
                         num_nodes, max_diffusion_step, output_dim,
                         batch_block=4):
    """Pallas implementation of DiffusionGraphConv.forward.

    supports: (num_supports, N, N) float32 dense support matrices
    inputs  : (B, N * input_dim)
    state   : (B, N * hid_dim)
    weight  : (input_size * num_matrices, output_dim)  row index = f*num_matrices + m
    bias    : (output_dim,)
    returns : (B, N * output_dim)
    """
    B = inputs.shape[0]
    N = num_nodes
    x_in = inputs.reshape(B, N, -1)
    h = state.reshape(B, N, -1)
    x0 = jnp.concatenate([x_in, h], axis=2).astype(jnp.float32)   # (B, N, F)
    F = x0.shape[-1]
    num_supports = supports.shape[0]
    num_matrices = num_supports * max_diffusion_step + 1

    LANE, SUB = 128, 8
    N_pad = ((N + SUB - 1) // SUB) * SUB
    F_pad = ((F + LANE - 1) // LANE) * LANE
    O_pad = ((output_dim + LANE - 1) // LANE) * LANE
    K = num_matrices * F                       # densely packed projection K
    K_pad = ((K + LANE - 1) // LANE) * LANE

    # Batch blocking: batch_block<=4 keeps the recurrence's live values under
    # the 64-vreg budget; force >=2 grid steps when B>=2 so the "parallel"
    # grid axis can be split across v7x's two TensorCores.
    TB = max(1, min(B, batch_block))
    num_blocks = pl.cdiv(B, TB)
    if num_blocks < 2 and B >= 2:
        TB = (B + 1) // 2
        num_blocks = pl.cdiv(B, TB)
    B_pad = num_blocks * TB

    # Pad nodes/features/batch, then fold TB batch elements into the lane dim.
    x0p = jnp.pad(x0, ((0, B_pad - B), (0, N_pad - N), (0, F_pad - F)))
    x0b = (x0p.reshape(num_blocks, TB, N_pad, F_pad)
               .transpose(0, 2, 1, 3)
               .reshape(num_blocks, N_pad, TB * F_pad))          # (nb, N, TB*F_pad)

    sup = jnp.pad(supports.astype(jnp.float32),
                  ((0, 0), (0, N_pad - N), (0, N_pad - N)))       # (S, N_pad, N_pad)

    # PyTorch flattens features as col = f*num_matrices + m; regroup m-major
    # and pack densely so one (TB*N, K_pad) @ (K_pad, O_pad) GEMM applies all
    # matrices and all batch elements of the block.
    w3 = weight.astype(jnp.float32).reshape(F, num_matrices, output_dim)
    w3 = jnp.transpose(w3, (1, 0, 2)).reshape(num_matrices * F, output_dim)
    w_fused = jnp.pad(w3, ((0, K_pad - K), (0, O_pad - output_dim)))
    b_pad = jnp.pad(bias.astype(jnp.float32),
                    (0, O_pad - output_dim)).reshape(1, O_pad)

    kernel = functools.partial(_dgc_kernel,
                               num_supports=num_supports,
                               max_diffusion_step=max_diffusion_step,
                               F=F, F_pad=F_pad, K_pad=K_pad,
                               N=N_pad, TB=TB)

    # VMEM budget derived from the actual footprint (slab + double-buffered
    # per-step blocks + resident operands), clamped to v7x's 64 MiB physical.
    slab_bytes = TB * N_pad * K_pad * 4
    x0_blk = N_pad * TB * F_pad * 4
    out_blk = TB * N_pad * O_pad * 4
    resident = 4 * (sup.size + w_fused.size + b_pad.size)
    need = slab_bytes + 2 * (x0_blk + out_blk) + 2 * resident
    vmem_limit = int(min(64 * 1024 * 1024, max(2 * need, 16 * 1024 * 1024)))

    # Advisory cost estimate (actual padded work performed by the kernel).
    diff_flops = (2 * N_pad * N_pad * TB * F_pad
                  * num_supports * max_diffusion_step * num_blocks)
    proj_flops = 2 * TB * N_pad * K_pad * O_pad * num_blocks
    bytes_accessed = 4 * (sup.size + x0b.size + w_fused.size
                          + num_blocks * TB * N_pad * O_pad) \
                     + 2 * num_blocks * slab_bytes

    out = pl.pallas_call(
        kernel,
        out_shape=jax.ShapeDtypeStruct((num_blocks, TB * N_pad, O_pad),
                                       jnp.float32),
        grid_spec=pltpu.PrefetchScalarGridSpec(
            num_scalar_prefetch=0,
            grid=(num_blocks,),
            in_specs=[
                pl.BlockSpec((num_supports, N_pad, N_pad), lambda i: (0, 0, 0)),
                pl.BlockSpec((1, N_pad, TB * F_pad), lambda i: (i, 0, 0)),
                pl.BlockSpec((K_pad, O_pad), lambda i: (0, 0)),
                pl.BlockSpec((1, O_pad), lambda i: (0, 0)),
            ],
            out_specs=pl.BlockSpec((1, TB * N_pad, O_pad), lambda i: (i, 0, 0)),
            scratch_shapes=[pltpu.VMEM((TB * N_pad, K_pad), jnp.float32)],
        ),
        compiler_params=pltpu.CompilerParams(
            dimension_semantics=("parallel",),      # batch blocks independent
            vmem_limit_bytes=vmem_limit,
        ),
        cost_estimate=pl.CostEstimate(
            flops=diff_flops + proj_flops,
            transcendentals=0,
            bytes_accessed=bytes_accessed),
    )(sup, x0b, w_fused, b_pad)

    # (num_blocks, TB*N_pad, O_pad) -> (B, N*output_dim): pure reshape + slice,
    # no output transpose (row order is already batch-major).
    out = out.reshape(B_pad, N_pad, O_pad)[:B, :N, :output_dim]
    return out.reshape(B, N * output_dim)


def diffusion_graph_conv_ref(supports, inputs, state, weight, bias, *,
                             num_nodes, max_diffusion_step, output_dim):
    """Pure-JAX reference mirroring the PyTorch forward exactly (f32 precision)."""
    B = inputs.shape[0]
    N = num_nodes
    x0 = jnp.concatenate(
        [inputs.reshape(B, N, -1), state.reshape(B, N, -1)], axis=2)
    hi = jax.lax.Precision.HIGHEST
    mats = [x0]
    if max_diffusion_step > 0:
        for s in range(supports.shape[0]):
            S = supports[s]
            x1 = jnp.einsum('ij,bjf->bif', S, x0, precision=hi)
            mats.append(x1)
            xkm2, xkm1 = x0, x1
            for _ in range(2, max_diffusion_step + 1):
                x2 = 2.0 * jnp.einsum('ij,bjf->bif', S, xkm1, precision=hi) - xkm2
                mats.append(x2)
                xkm2, xkm1 = xkm1, x2
    x = jnp.stack(mats, axis=1)                  # (B, M, N, F)
    x = jnp.transpose(x, (0, 2, 3, 1))           # (B, N, F, M)
    x = x.reshape(B * N, -1)
    x = jnp.dot(x, weight, precision=hi) + bias
    return x.reshape(B, N * output_dim)


if __name__ == "__main__":
    # Small, DCGRU-style shapes.
    batch = 2
    num_nodes = 16
    input_dim = 4
    hid_dim = 8
    output_dim = 8
    max_diffusion_step = 2
    num_supports = 2                              # 'dual_random_walk'
    input_size = input_dim + hid_dim
    num_matrices = num_supports * max_diffusion_step + 1

    key = jax.random.PRNGKey(0)
    k_sup, k_in, k_st, k_w = jax.random.split(key, 4)

    # TODO(synk): original module uses torch.sparse supports; represented densely here.
    supports = jax.random.normal(
        k_sup, (num_supports, num_nodes, num_nodes), dtype=jnp.float32) * 0.1
    inputs = jax.random.normal(k_in, (batch, num_nodes * input_dim), dtype=jnp.float32)
    state = jax.random.normal(k_st, (batch, num_nodes * hid_dim), dtype=jnp.float32)

    # Xavier-normal init with gain=1.414 (deterministic, matches __init__ shapes).
    fan_in = input_size * num_matrices
    fan_out = output_dim
    std = 1.414 * (2.0 / (fan_in + fan_out)) ** 0.5
    weight = jax.random.normal(k_w, (fan_in, fan_out), dtype=jnp.float32) * std
    bias = jnp.zeros((output_dim,), dtype=jnp.float32)   # bias_start = 0.0

    out = diffusion_graph_conv(
        supports, inputs, state, weight, bias,
        num_nodes=num_nodes, max_diffusion_step=max_diffusion_step,
        output_dim=output_dim)
    out = jax.block_until_ready(out)

    ref = diffusion_graph_conv_ref(
        supports, inputs, state, weight, bias,
        num_nodes=num_nodes, max_diffusion_step=max_diffusion_step,
        output_dim=output_dim)

    assert out.shape == (batch, num_nodes * output_dim), out.shape
    assert jnp.allclose(out, ref, rtol=1e-4, atol=1e-4), \
        f"max abs err = {jnp.max(jnp.abs(out - ref))}"
    print("KERNEL_OK")
</pallas_src>

<mosaic_0001>
module attributes {stable_mosaic.version = 11 : i64} {
  func.func @_dgc_kernel(%arg0: i32, %arg1: memref<2x16x16xf32, #tpu.memory_space<vmem>>, %arg2: memref<1x16x128xf32, #tpu.memory_space<vmem>>, %arg3: memref<128x128xf32, #tpu.memory_space<vmem>>, %arg4: memref<1x128xf32, #tpu.memory_space<vmem>>, %arg5: memref<1x16x128xf32, #tpu.memory_space<vmem>>, %arg6: memref<16x128xf32, #tpu.memory_space<vmem>>) attributes {dimension_semantics = [#tpu.dimension_semantics<parallel>], iteration_bounds = array<i64: 2>, scalar_prefetch = 0 : i64, scratch_operands = 1 : i64, tpu.core_type = #tpu.core_type<tc>, window_params = [{pipeline_mode = #tpu.pipeline_mode<synchronous>, transform_indices = @transform_0, window_bounds = array<i64: 2, 16, 16>}, {transform_indices = @transform_1, window_bounds = array<i64: 1, 16, 128>}, {pipeline_mode = #tpu.pipeline_mode<synchronous>, transform_indices = @transform_2, window_bounds = array<i64: 128, 128>}, {pipeline_mode = #tpu.pipeline_mode<synchronous>, transform_indices = @transform_3, window_bounds = array<i64: 1, 128>}, {transform_indices = @transform_4, window_bounds = array<i64: 1, 16, 128>}]} {
    %c0 = arith.constant 0 : index
    %c0_0 = arith.constant 0 : index
    %c0_1 = arith.constant 0 : index
    %0 = vector.load %arg2[%c0, %c0_0, %c0_1] : memref<1x16x128xf32, #tpu.memory_space<vmem>>, vector<1x16x128xf32>
    %1 = vector.shape_cast %0 : vector<1x16x128xf32> to vector<16x128xf32>
    %cst = arith.constant 0.000000e+00 : f32
    %2 = vector.broadcast %cst : f32 to vector<16x68xf32>
    %c0_2 = arith.constant 0 : index
    %c60 = arith.constant 60 : index
    %3 = vector.load %arg6[%c0_2, %c60] : memref<16x128xf32, #tpu.memory_space<vmem>>, vector<16x68xf32>
    tpu.vector_store %arg6[%c0_2, %c60], %2 {strides = array<i32>} : memref<16x128xf32, #tpu.memory_space<vmem>>, vector<16x68xf32>,
    %4 = vector.extract_strided_slice %1 {offsets = [0, 0], sizes = [16, 12], strides = [1, 1]} : vector<16x128xf32> to vector<16x12xf32>
    %c0_3 = arith.constant 0 : index
    %c0_4 = arith.constant 0 : index
    %5 = vector.load %arg6[%c0_3, %c0_4] : memref<16x128xf32, #tpu.memory_space<vmem>>, vector<16x12xf32>
    tpu.vector_store %arg6[%c0_3, %c0_4], %4 {strides = array<i32>} : memref<16x128xf32, #tpu.memory_space<vmem>>, vector<16x12xf32>,
    %c0_5 = arith.constant 0 : index
    %c0_6 = arith.constant 0 : index
    %c0_7 = arith.constant 0 : index
    %6 = vector.load %arg1[%c0_5, %c0_6, %c0_7] : memref<2x16x16xf32, #tpu.memory_space<vmem>>, vector<1x16x16xf32>
    %7 = vector.shape_cast %6 : vector<1x16x16xf32> to vector<16x16xf32>
    %cst_8 = arith.constant dense<0.000000e+00> : vector<16x128xf32>
    %8 = tpu.matmul %7, %1, %cst_8 {dimension_numbers = #tpu.dot_dimension_numbers<[1], [0], [0], [1], [0, 0, 1, 1], [], []>} : vector<16x16xf32>, vector<16x128xf32>, vector<16x128xf32> -> vector<16x128xf32>
    %9 = vector.extract_strided_slice %8 {offsets = [0, 0], sizes = [16, 12], strides = [1, 1]} : vector<16x128xf32> to vector<16x12xf32>
    %c0_9 = arith.constant 0 : index
    %c12 = arith.constant 12 : index
    %10 = vector.load %arg6[%c0_9, %c12] : memref<16x128xf32, #tpu.memory_space<vmem>>, vector<16x12xf32>
    tpu.vector_store %arg6[%c0_9, %c12], %9 {strides = array<i32>} : memref<16x128xf32, #tpu.memory_space<vmem>>, vector<16x12xf32>,
    %c1 = arith.constant 1 : index
    %c0_10 = arith.constant 0 : index
    %c0_11 = arith.constant 0 : index
    %11 = vector.load %arg1[%c1, %c0_10, %c0_11] : memref<2x16x16xf32, #tpu.memory_space<vmem>>, vector<1x16x16xf32>
    %12 = vector.shape_cast %11 : vector<1x16x16xf32> to vector<16x16xf32>
    %cst_12 = arith.constant dense<0.000000e+00> : vector<16x128xf32>
    %13 = tpu.matmul %12, %1, %cst_12 {dimension_numbers = #tpu.dot_dimension_numbers<[1], [0], [0], [1], [0, 0, 1, 1], [], []>} : vector<16x16xf32>, vector<16x128xf32>, vector<16x128xf32> -> vector<16x128xf32>
    %14 = vector.extract_strided_slice %13 {offsets = [0, 0], sizes = [16, 12], strides = [1, 1]} : vector<16x128xf32> to vector<16x12xf32>
    %c0_13 = arith.constant 0 : index
    %c36 = arith.constant 36 : index
    %15 = vector.load %arg6[%c0_13, %c36] : memref<16x128xf32, #tpu.memory_space<vmem>>, vector<16x12xf32>
    tpu.vector_store %arg6[%c0_13, %c36], %14 {strides = array<i32>} : memref<16x128xf32, #tpu.memory_space<vmem>>, vector<16x12xf32>,
    %c0_14 = arith.constant 0 : index
    %c0_15 = arith.constant 0 : index
    %c0_16 = arith.constant 0 : index
    %16 = vector.load %arg1[%c0_14, %c0_15, %c0_16] : memref<2x16x16xf32, #tpu.memory_space<vmem>>, vector<1x16x16xf32>
    %17 = vector.shape_cast %16 : vector<1x16x16xf32> to vector<16x16xf32>
    %cst_17 = arith.constant dense<0.000000e+00> : vector<16x128xf32>
    %18 = tpu.matmul %17, %8, %cst_17 {dimension_numbers = #tpu.dot_dimension_numbers<[1], [0], [0], [1], [0, 0, 1, 1], [], []>} : vector<16x16xf32>, vector<16x128xf32>, vector<16x128xf32> -> vector<16x128xf32>
    %cst_18 = arith.constant 2.000000e+00 : f32
    %19 = vector.broadcast %cst_18 : f32 to vector<16x128xf32>
    %20 = arith.mulf %19, %18 : vector<16x128xf32>
    %21 = arith.subf %20, %1 : vector<16x128xf32>
    %22 = vector.extract_strided_slice %21 {offsets = [0, 0], sizes = [16, 12], strides = [1, 1]} : vector<16x128xf32> to vector<16x12xf32>
    %c0_19 = arith.constant 0 : index
    %c24 = arith.constant 24 : index
    %23 = vector.load %arg6[%c0_19, %c24] : memref<16x128xf32, #tpu.memory_space<vmem>>, vector<16x12xf32>
    tpu.vector_store %arg6[%c0_19, %c24], %22 {strides = array<i32>} : memref<16x128xf32, #tpu.memory_space<vmem>>, vector<16x12xf32>,
    %c1_20 = arith.constant 1 : index
    %c0_21 = arith.constant 0 : index
    %c0_22 = arith.constant 0 : index
    %24 = vector.load %arg1[%c1_20, %c0_21, %c0_22] : memref<2x16x16xf32, #tpu.memory_space<vmem>>, vector<1x16x16xf32>
    %25 = vector.shape_cast %24 : vector<1x16x16xf32> to vector<16x16xf32>
    %cst_23 = arith.constant dense<0.000000e+00> : vector<16x128xf32>
    %26 = tpu.matmul %25, %13, %cst_23 {dimension_numbers = #tpu.dot_dimension_numbers<[1], [0], [0], [1], [0, 0, 1, 1], [], []>} : vector<16x16xf32>, vector<16x128xf32>, vector<16x128xf32> -> vector<16x128xf32>
    %cst_24 = arith.constant 2.000000e+00 : f32
    %27 = vector.broadcast %cst_24 : f32 to vector<16x128xf32>
    %28 = arith.mulf %27, %26 : vector<16x128xf32>
    %29 = arith.subf %28, %1 : vector<16x128xf32>
    %30 = vector.extract_strided_slice %29 {offsets = [0, 0], sizes = [16, 12], strides = [1, 1]} : vector<16x128xf32> to vector<16x12xf32>
    %c0_25 = arith.constant 0 : index
    %c48 = arith.constant 48 : index
    %31 = vector.load %arg6[%c0_25, %c48] : memref<16x128xf32, #tpu.memory_space<vmem>>, vector<16x12xf32>
    tpu.vector_store %arg6[%c0_25, %c48], %30 {strides = array<i32>} : memref<16x128xf32, #tpu.memory_space<vmem>>, vector<16x12xf32>,
    %c0_26 = arith.constant 0 : index
    %c0_27 = arith.constant 0 : index
    %32 = vector.load %arg6[%c0_26, %c0_27] : memref<16x128xf32, #tpu.memory_space<vmem>>, vector<16x128xf32>
    %c0_28 = arith.constant 0 : index
    %c0_29 = arith.constant 0 : index
    %33 = vector.load %arg3[%c0_28, %c0_29] : memref<128x128xf32, #tpu.memory_space<vmem>>, vector<128x128xf32>
    %cst_30 = arith.constant dense<0.000000e+00> : vector<16x128xf32>
    %34 = tpu.matmul %32, %33, %cst_30 {dimension_numbers = #tpu.dot_dimension_numbers<[1], [0], [0], [1], [0, 0, 1, 1], [], []>} : vector<16x128xf32>, vector<128x128xf32>, vector<16x128xf32> -> vector<16x128xf32>
    %c0_31 = arith.constant 0 : index
    %c0_32 = arith.constant 0 : index
    %35 = vector.load %arg4[%c0_31, %c0_32] : memref<1x128xf32, #tpu.memory_space<vmem>>, vector<1x128xf32>
    %36 = vector.broadcast %35 : vector<1x128xf32> to vector<16x128xf32>
    %37 = arith.addf %34, %36 : vector<16x128xf32>
    %c0_33 = arith.constant 0 : index
    %c0_34 = arith.constant 0 : index
    %c0_35 = arith.constant 0 : index
    %38 = vector.load %arg5[%c0_33, %c0_34, %c0_35] : memref<1x16x128xf32, #tpu.memory_space<vmem>>, vector<1x16x128xf32>
    %39 = vector.shape_cast %38 : vector<1x16x128xf32> to vector<16x128xf32>
    %40 = vector.shape_cast %37 : vector<16x128xf32> to vector<1x16x128xf32>
    tpu.vector_store %arg5[%c0_33, %c0_34, %c0_35], %40 {strides = array<i32>} : memref<1x16x128xf32, #tpu.memory_space<vmem>>, vector<1x16x128xf32>,
    return
  }
  func.func @transform_0(%arg0: i32) -> (i32, i32, i32) {
    %c0_i32 = arith.constant 0 : i32
    %c0_i32_0 = arith.constant 0 : i32
    %c0_i32_1 = arith.constant 0 : i32
    %c0_i32_2 = arith.constant 0 : i32
    return %c0_i32, %c0_i32_0, %c0_i32_1 : i32, i32, i32
  }
  func.func @transform_1(%arg0: i32) -> (i32, i32, i32) {
    %c0_i32 = arith.constant 0 : i32
    %c0_i32_0 = arith.constant 0 : i32
    %c0_i32_1 = arith.constant 0 : i32
    return %arg0, %c0_i32, %c0_i32_0 : i32, i32, i32
  }
  func.func @transform_2(%arg0: i32) -> (i32, i32) {
    %c0_i32 = arith.constant 0 : i32
    %c0_i32_0 = arith.constant 0 : i32
    %c0_i32_1 = arith.constant 0 : i32
    return %c0_i32, %c0_i32_0 : i32, i32
  }
  func.func @transform_3(%arg0: i32) -> (i32, i32) {
    %c0_i32 = arith.constant 0 : i32
    %c0_i32_0 = arith.constant 0 : i32
    %c0_i32_1 = arith.constant 0 : i32
    return %c0_i32, %c0_i32_0 : i32, i32
  }
  func.func @transform_4(%arg0: i32) -> (i32, i32, i32) {
    %c0_i32 = arith.constant 0 : i32
    %c0_i32_0 = arith.constant 0 : i32
    %c0_i32_1 = arith.constant 0 : i32
    return %arg0, %c0_i32, %c0_i32_0 : i32, i32, i32
  }
}

</mosaic_0001>

<bundles_post_ra>
// kernel: tpu_custom_call.1
= control target key start
LH: loop header
LB: loop body
LE: loop exit
PB: predicated region body
PF: predicated region fallthrough
CT: control target
= control target key end

     0   :  { %9 = vsyncpa [#allocation4], 0  ;;  %s1567_s0 = inlined_call_operand.hbm [shape: f32[2,16,16], index: 0, kind: input, shape index: {}]   ;;  %s1568_s1 = inlined_call_operand.hbm [shape: f32[2,16,128], index: 1, kind: input, shape index: {}]   ;;  %s1569_s2 = inlined_call_operand.hbm [shape: f32[128,128], index: 2, kind: input, shape index: {}]   ;;  %s1570_s3 = inlined_call_operand.vmem [shape: f32[1,128], index: 3, kind: input, shape index: {}]   ;;  %s1571_s4 = inlined_call_operand.hbm [shape: f32[2,16,128], index: 4, kind: output, shape index: {}]  }
   0x1   :  { %10 = vsyncpa [#allocation7], 0 }
   0x2   :  { %12 = vsyncpa [#allocation7 + $0x1], 0 }
   0x3   :  { %13 = vsyncpa [#allocation5], 0 }
   0x4   :  { %15 = vsyncpa [#allocation5 + $0x1], 0  ;;  %s1299_s15 = smov 0   ;;  %s1301_s16 = smov 0  }
   0x5   :  { %s1303_s17 = smov 0   ;;  %s1305_s18 = smov 0  }
   0x6 LB: > { %s1320_s19 = sadd.s32 4294967295, %s1259_s18   ;;  %s849_s20 = sadd.s32 4294967294, %s1259_s18   ;;  %s1259_s18 = sphi %s1305_s18, %s1599_s18   ;;  %s1255_s17 = sphi %s1303_s17, %s1598_s17   ;;  %s1251_s16 = sphi %s1301_s16, %s1597_s16   ;;  %s1247_s15 = sphi %s1299_s15, %s1596_s15  }
   0x7   : > { %s1324_s21 = sadd.s32 1, %s1259_s18   ;;  %s49_s22 = sadd.s32 1, %s1255_s17 }
   0x8   : > { %s46_s23 = ssub.s32 %s1259_s18, %s1324_s21  ;;  %p56_p0 = scmp.ne.s32.totalorder %s1255_s17, %s1251_s16 }
   0x9   : > { %p47_p1 = scmp.eq.s32.totalorder %s46_s23, 0  ;;  %p57_p2 = scmp.eq.s32.totalorder %s1259_s18, 0 }
   0xa   : > { %p62_p3 = scmp.ne.s32.totalorder %s1251_s16, %s1247_s15  ;;  %p1573_p4 = scmp.eq.s32.totalorder %s1320_s19, 0 }
   0xb   : > { %s1336_s24 = scalar_select %p47_p1, %s1255_s17, %s49_s22  }
   0xc   : > { %p1338_p5 = por %p57_p2, %p56_p0  ;;  %p1344_p6 = por %p1573_p4, %p62_p3 }
   0xd   : > { %p128_p7 = scmp.eq.s32.totalorder %s1320_s19, 1  ;;  %p134_p8 = scmp.eq.s32.totalorder %s849_s20, 1 }
   0xe   : > { %s1577_s25 = scalar_select %p1338_p5, 1, 0 }
   0xf   : > { %s1578_s26 = scalar_select %p1344_p6, 1, 0 }
  0x10   : > { %p850_p9 = scmp.ge.s32.totalorder %s1259_s18, 1  ;;  %p141_p10 = scmp.lt.s32.totalorder %s1259_s18, 3 }
  0x11   : > { %p1351_p11 = por %p128_p7, %p56_p0  ;;  %p1355_p12 = por %p134_p8, %p62_p3 }
  0x12   : > { %p1359_p13 = pnand %p850_p9, %p141_p10  ;;  %s1261_s30 = smov [#allocation8]  }
  0x13   : > { %s1579_s27 = scalar_select %p1351_p11, 1, 0 }
  0x14   : > { %s1580_s28 = scalar_select %p1355_p12, 1, 0 }
  0x15   : > { %s1581_s29 = scalar_select %p1359_p13, 1, 0 }
  0x16   : > { %p1035_p1 = pneg %p1359_p13  ;;  %s166_s5 = sshll.u32 %s1261_s30, 4  ;;  %s167_s5 = int_to_ptr.vmem [resolvable:$true] %s166_s5 }
  0x17   : > { %s1262_s7 = smov [#allocation3]   ;;  %s1099_s11 = scalar_lea.hbm %s1569_s2, 2048 }
  0x18   : > { %p1368_p6 = pnand %p1035_p1, %p1573_p4  ;;  %s153_s8 = sshll.u32 %s1262_s7, 4  ;;  %s154_s8 = int_to_ptr.vmem [resolvable:$true] %s153_s8 }
  0x19   : > { %p1100_p3 = scmp.ne.s32.totalorder %s1569_s2, %s1099_s11  ;;  %p1106_p10 = scmp.lt.u32.totalorder %s1099_s11, %s1569_s2 }
  0x1a   : > { %p1101_p7 = pneg %p1368_p6 }
  0x1c   : > { %p1102_p8 = pnand %p1101_p7, %p1100_p3 }
  0x1e   : > { %p1103_p9 = pneg %p1102_p8 }
  0x20   : > { %p1108_p1 = pnand %p1106_p10, %p1103_p9 }
  0x22   : > { %1111 = shalt.err (!%p1108_p1)
}
  0x23   : > { %s1112_s22 = scalar_lea.vmem %s167_s5, 2048  ;;  %p1120_p12 = scmp.lt.s32.totalorder %s167_s5, %s167_s5 }
  0x24   : > { %p1113_p2 = scmp.ne.s32.totalorder %s167_s5, %s1112_s22  ;;  %p1121_p11 = scmp.lt.s32.totalorder %s1112_s22, %s1112_s22 }
  0x26   : > { %p1115_p4 = pnand %p1113_p2, %p1101_p7  ;;  %p1122_p13 = por %p1121_p11, %p1120_p12 }
  0x28   : > { %p1116_p0 = pneg %p1115_p4 }
  0x2a   : > { %p1123_p5 = pnand %p1122_p13, %p1116_p0 }
  0x2c   : > { %1126 = shalt.err (!%p1123_p5)
}
  0x2d   : > { %s1263_s23 = smov 128   ;;  %s1264_s30 = smov 8  }
  0x2e   : > { %1041 = dma.hbm_to_vmem [thread:$0]  (!%p1368_p6), %s1569_s2, 2048, %s167_s5, [#allocation7], %s1263_s23, %s1263_s23, %s1264_s30  }
  0x2f   : > { %p1583_p4 = scmp.ne.s32.totalorder %s1577_s25, 0  ;;  %p1584_p2 = scmp.lt.s32.totalorder %s1259_s18, 2 }
  0x30   : > { %s1127_s13 = scalar_lea.hbm %s1567_s0, 512 }
  0x31   : > { %p1402_p3 = pnand %p1584_p2, %p1583_p4  ;;  %p1128_p5 = scmp.ne.s32.totalorder %s1567_s0, %s1127_s13 }
  0x32   : > { %p1134_p13 = scmp.lt.u32.totalorder %s1127_s13, %s1567_s0 }
  0x33   : > { %s1585_s10 = scalar_select %p1402_p3, 1, 0 }
  0x34   : > { %p1130_p11 = pnand %p1128_p5, %p1101_p7 }
  0x36   : > { %p1131_p12 = pneg %p1130_p11 }
  0x38   : > { %p1136_p0 = pnand %p1134_p13, %p1131_p12 }
  0x3a   : > { %1139 = shalt.err (!%p1136_p0)
}
  0x3b   : > { %s1140_s22 = scalar_lea.vmem %s154_s8, 512  ;;  %p1148_p1 = scmp.lt.s32.totalorder %s154_s8, %s154_s8 }
  0x3c   : > { %p1141_p8 = scmp.ne.s32.totalorder %s154_s8, %s1140_s22  ;;  %p1149_p4 = scmp.lt.s32.totalorder %s1140_s22, %s1140_s22 }
  0x3e   : > { %p1143_p9 = pnand %p1141_p8, %p1101_p7  ;;  %p1150_p2 = por %p1149_p4, %p1148_p1 }
  0x40   : > { %p1144_p10 = pneg %p1143_p9 }
  0x42   : > { %p1151_p3 = pnand %p1150_p2, %p1144_p10 }
  0x44   : > { %1154 = shalt.err (!%p1151_p3)
}
  0x45   : > { %1038 = dma.hbm_to_vmem [thread:$0]  (!%p1368_p6), %s1567_s0, 512, %s154_s8, [#allocation4], %s1263_s23, %s1263_s23, %s1264_s30  }
  0x46   : > { %s183_s11 = sand.u32 1, %s1259_s18   ;;  %s185_s12 = sand.u32 1, %s1255_s17  }
  0x47   : > { %s854_s13 = sshll.u32 %s185_s12, 4  ;;  %s876_s14 = sshll.u32 %s1259_s18, 8 }
  0x48   : > { %s1435_s6 = scalar_lea.hbm %s1568_s1, %s876_s14  ;;  %s187_s25 = scalar_lea.vmem [#allocation6], %s854_s13 }
  0x49   : > { %s194_s22 = sshll.u32 %s187_s25, 4  ;;  %s1439_s7 = scalar_lea.sflag [#allocation7], %s183_s11  ;;  %s1437_s22 = int_to_ptr.vmem [resolvable:$true] %s194_s22 }
  0x4a   : > { %s1155_s8 = scalar_lea.hbm %s1435_s6, 256  ;;  %p1586_p7 = scmp.ne.s32.totalorder %s1585_s10, 0 }
  0x4b   : > { %p1156_p6 = scmp.ne.s32.totalorder %s1435_s6, %s1155_s8  ;;  %s1160_s14 = scalar_lea.hbm %s1568_s1, 512 }
  0x4c   : > { %p1157_p3 = pneg %p1586_p7  ;;  %p1161_p12 = scmp.lt.u32.totalorder %s1435_s6, %s1568_s1 }
  0x4d   : > { %p1162_p13 = scmp.lt.u32.totalorder %s1160_s14, %s1155_s8  ;;  %p1164_p8 = scmp.lt.u32.totalorder %s1155_s8, %s1435_s6 }
  0x4e   : > { %p1158_p5 = pnand %p1157_p3, %p1156_p6 }
  0x4f   : > { %p1163_p0 = por %p1162_p13, %p1161_p12 }
  0x50   : > { %p1159_p11 = pneg %p1158_p5 }
  0x51   : > { %p1165_p9 = por %p1164_p8, %p1163_p0 }
  0x53   : > { %p1166_p10 = pnand %p1165_p9, %p1159_p11 }
  0x55   : > { %1169 = shalt.err (!%p1166_p10)
}
  0x56   : > { %s1170_s11 = scalar_lea.vmem %s1437_s22, 256  ;;  %s1265_s13 = smov [#allocation6]  }
  0x57   : > { %p1171_p1 = scmp.ne.s32.totalorder %s1437_s22, %s1170_s11  ;;  %s1175_s25 = sshll.u32 %s1265_s13, 4  ;;  %s1176_s25 = int_to_ptr.vmem [resolvable:$false] %s1175_s25 }
  0x58   : > { %s1177_s9 = scalar_lea.vmem %s1176_s25, 512  ;;  %p1178_p6 = scmp.lt.s32.totalorder %s1437_s22, %s1176_s25 }
  0x59   : > { %p1173_p4 = pnand %p1171_p1, %p1157_p3  ;;  %p1179_p5 = scmp.lt.s32.totalorder %s1177_s9, %s1170_s11 }
  0x5b   : > { %p1174_p2 = pneg %p1173_p4  ;;  %p1180_p12 = por %p1179_p5, %p1178_p6 }
  0x5d   : > { %p1181_p13 = pnand %p1180_p12, %p1174_p2 }
  0x5f   : > { %1184 = shalt.err (!%p1181_p13)
}
  0x60   : > { %1045 = dma.hbm_to_vmem [thread:$0]  (!%p1586_p7), %s1435_s6, 256, %s1437_s22, %s1439_s7, %s1263_s23, %s1263_s23, %s1264_s30  }
  0x61   : > { %p1587_p3 = scmp.ne.s32.totalorder %s1581_s29, 0 }
  0x62   : > { %p1588_p11 = scmp.eq.s32.totalorder (!%p1587_p3), %s1320_s19, 0 }
  0x63   : > { %206 = sbr.rel (%p1587_p3) target bundleno = 916 (0x394), region = 36 }
  0x6a   : > { %1230 = dma.done.wait (%p1588_p11), [#allocation4], 512   ;;  %p1589_p0 = pmov %p1588_p11 }
  0x6b   : > { %s212_s10 = sand.u32 1, %s1320_s19   ;;  %s214_s8 = sand.u32 1, %s1251_s16  }
  0x6c   : > { %1232 = vsyncadd (%p1589_p0), [#allocation4], 4294966784  ;;  %s1480_s12 = sshll.u32 %s214_s8, 4  ;;  %s213_s23 = scalar_lea.sflag [#allocation7], %s212_s10 }
  0x6d   : > { %s216_s30 = scalar_lea.vmem [#allocation6], %s1480_s12  ;;  %p1590_p7 = scmp.ne.s32.totalorder %s1578_s26, 0 }
  0x6f   : > { %1234 = dma.done.wait (%p1590_p7), %s213_s23, 256  }
  0x70   : > { %1236 = vsyncadd (%p1590_p7), %s213_s23, 4294967040  ;;  %p1591_p8 = pmov %p1589_p0 }
  0x71   : > { %p1592_p9 = pmov %p1589_p0 }
  0x72   : > { %1238 = dma.done.wait (%p1591_p8), [#allocation7], 2048  }
  0x73   : > { %1240 = vsyncadd (%p1592_p9), [#allocation7], 4294965248  ;;  %vm255_vm0 = vcmask 130048   ;;  %v1491_v0 = vld [vmem:[%s216_s30] sm:$0xff]  ;;  %v1493_v1 = vld [vmem:[%s216_s30 + $0x8] sm:$0xff]  ;;  %vm247_vm1 = vcmask 1048032  }
  0x74   : > { %v253_v2 = vld [vmem:[#allocation3] sm:$0xff]  ;;  %v975_v3 = vpack.c.bf16 %v1493_v1, %v1491_v0  ;;  %v254_v4 = vld [vmem:[#allocation3 + $0x8] sm:$0xff]  ;;  %v349_v5 = vld [vmem:[#allocation3 + $0x10] sm:$0xff]  ;;  %vm250_vm2 = vcmask 97280   ;;  %v1266_v7 = vmov 0.0   ;;  %s1267_s26 = smov 12  }
  0x75   : > { %916 = vmatprep.mubr.msk.f32.mxu1 %vm255_vm0, %v253_v2  ;;  %v350_v6 = vld [vmem:[#allocation3 + $0x18] sm:$0xff]  ;;  %249 = vst.msk [vmem:[#allocation2 + $0x8] sm:$0xff] %vm247_vm1, %v1266_v7  ;;  %248 = vst.msk [vmem:[#allocation2] sm:$0xff] %vm247_vm1, %v1266_v7  ;;  %s1268_s29 = smov 36   ;;  %v641_v14 = vld [vmem:[#allocation8] sm:$0xff]  ;;  %vm345_vm3 = vcmask 195680  }
  0x76   : > { %976 = vmatprep.subr.bf16.mxu1 %v975_v3  ;;  %252 = vst.msk [vmem:[#allocation2 + $0x8] sm:$0xff] %vm250_vm2, %v1493_v1  ;;  %251 = vst.msk [vmem:[#allocation2] sm:$0xff] %vm250_vm2, %v1491_v0  ;;  %v642_v15 = vld [vmem:[#allocation8 + $0x8] sm:$0xff]  ;;  %v643_v16 = vld [vmem:[#allocation8 + $0x10] sm:$0xff]  ;;  %vm440_vm4 = vcmask 392480   ;;  %s1269_s6 = smov 24  }
  0x77   : > { %978 = vmatpush3.bf16.msra.mxu1 %v975_v3  ;;  %v991_v17 = vpack.c.bf16 %v642_v15, %v641_v14  ;;  %v644_v18 = vld [vmem:[#allocation8 + $0x18] sm:$0xff]  ;;  %v645_v20 = vld [vmem:[#allocation8 + $0x20] sm:$0xff]  ;;  %v646_v21 = vld [vmem:[#allocation8 + $0x28] sm:$0xff]  ;;  %s1270_s22 = smov 48   ;;  %vm538_vm5 = vcmask 294080   ;;  %vm636_vm6 = vcmask 490880  }
  0x78   : > { %980 = vmatprep.subr.bf16.mxu1 %v975_v3  ;;  %v995_v19 = vpack.c.bf16 %v644_v18, %v643_v16  ;;  %v999_v22 = vpack.c.bf16 %v646_v21, %v645_v20  ;;  %v647_v23 = vld [vmem:[#allocation8 + $0x30] sm:$0xff]  ;;  %v648_v24 = vld [vmem:[#allocation8 + $0x38] sm:$0xff]  ;;  %v649_v26 = vld [vmem:[#allocation8 + $0x40] sm:$0xff]  ;;  %s244_s7 = scalar_lea.vmem [#allocation9], %s1480_s12  ;;  %s877_s11 = sshll.u32 %s1320_s19, 8 }
  0x79   : > { %992 = vmatprep.subr.bf16.mxu0 %v991_v17  ;;  %v1003_v25 = vpack.c.bf16 %v648_v24, %v647_v23  ;;  %v650_v27 = vld [vmem:[#allocation8 + $0x48] sm:$0xff]  ;;  %v651_v33 = vld [vmem:[#allocation8 + $0x50] sm:$0xff]  ;;  %v652_v34 = vld [vmem:[#allocation8 + $0x58] sm:$0xff]  ;;  %s755_s14 = sshll.u32 %s244_s7, 4  ;;  %s1521_s9 = scalar_lea.hbm %s1571_s4, %s877_s11  ;;  %s1516_s14 = int_to_ptr.vmem [resolvable:$true] %s755_s14 }
  0x7a   : > { %917 = vmatmul.mubr.msk.f32.vlgmr.msra.gmra.mrb[0].mxu1 %vm255_vm0, %v254_v4  ;;  %994 = vmatpush3.bf16.msra.mxu0 %v991_v17  ;;  %v1007_v28 = vpack.c.bf16 %v650_v27, %v649_v26  ;;  %v1011_v35 = vpack.c.bf16 %v652_v34, %v651_v33  ;;  %v653_v36 = vld [vmem:[#allocation8 + $0x60] sm:$0xff]  ;;  %v654_v37 = vld [vmem:[#allocation8 + $0x68] sm:$0xff]  ;;  %v655_v39 = vld [vmem:[#allocation8 + $0x70] sm:$0xff]  ;;  %s1525_s10 = scalar_lea.sflag [#allocation5], %s214_s8  ;;  %s1185_s19 = scalar_lea.vmem %s1516_s14, 256 }
  0x7b   : > { %982 = vmatpush3.bf16.msra.mxu1 %v975_v3  ;;  %923 = vmatprep.mubr.msk.f32.mxu1 %vm255_vm0, %v349_v5  ;;  %v1015_v38 = vpack.c.bf16 %v654_v37, %v653_v36  ;;  %v656_v40 = vld [vmem:[#allocation8 + $0x78] sm:$0xff]  ;;  %v870_v60 = vld [vmem:[%s1570_s3] ss:$0 sm:$0xff]  ;;  %p1186_p10 = scmp.ne.s32.totalorder %s1516_s14, %s1185_s19  ;;  %p1593_p1 = scmp.ne.s32.totalorder %s1579_s27, 0 }
  0x7c   : > { %996 = vmatprep.subr.bf16.mxu0 %v995_v19  ;;  %v1019_v41 = vpack.c.bf16 %v656_v40, %v655_v39  ;;  %s1271_s12 = smov [#allocation9]  }
  0x7d   : > { %p1187_p4 = pnand %p1186_p10, %p1593_p1  ;;  %s1189_s23 = sshll.u32 %s1271_s12, 4  ;;  %s1190_s23 = int_to_ptr.vmem [resolvable:$false] %s1189_s23 }
  0x7e   : > { %924 = vmatmul.mubr.msk.f32.vlgmr.msra.gmra.mrb[2].mxu1 %vm255_vm0, %v350_v6  ;;  %998 = vmatpush3.bf16.msra.mxu0 %v995_v19  ;;  %s1191_s30 = scalar_lea.vmem %s1190_s23, 512  ;;  %p1192_p6 = scmp.lt.s32.totalorder %s1516_s14, %s1190_s23 }
  0x7f   : > { %930 = vmatprep.mubr.msk.f32.mxu1 %vm255_vm0, %v253_v2  ;;  %1000 = vmatprep.subr.bf16.mxu0 %v999_v22  ;;  %p1188_p2 = pneg %p1187_p4  ;;  %p1193_p5 = scmp.lt.s32.totalorder %s1191_s30, %s1185_s19 }
  0x81   : > { %p1194_p12 = por %p1193_p5, %p1192_p6 }
  0x82   : > { %1002 = vmatpush3.bf16.msra.mxu0 %v999_v22 }
  0x83   : > { %1004 = vmatprep.subr.bf16.mxu0 %v1003_v25  ;;  %p1195_p13 = pnand %p1194_p12, %p1188_p2 }
  0x86   : > { %1006 = vmatpush3.bf16.msra.mxu0 %v1003_v25 }
  0x87   : > { %1008 = vmatprep.subr.bf16.mxu0 %v1007_v28 }
  0x8a   : > { %1010 = vmatpush3.bf16.msra.mxu0 %v1007_v28 }
  0x8b   : > { %1012 = vmatprep.subr.bf16.mxu0 %v1011_v35 }
  0x8e   : > { %1014 = vmatpush3.bf16.msra.mxu0 %v1011_v35 }
  0x8f   : > { %1016 = vmatprep.subr.bf16.mxu0 %v1015_v38 }
  0x92   : > { %1018 = vmatpush3.bf16.msra.mxu0 %v1015_v38 }
  0x93   : > { %1020 = vmatprep.subr.bf16.mxu0 %v1019_v41 }
  0x96   : > { %1022 = vmatpush3.bf16.msra.mxu0 %v1019_v41 }
 0x14d   : > { %v918_v8 = vpop.f32.mrb[0].mxu1 }
 0x14e   : > { %341 = vrot.lane.b32.xlu0 %v918_v8, %s1267_s26  ;;  %v328_v9 = vpop.f32.mrb[1].mxu1 }
 0x14f   : > { %v983_v10 = vpack.c.bf16 %v918_v8, %v328_v9 }
 0x151   : > { %v925_v11 = vpop.f32.mrb[2].mxu1  ;;  %984 = vmatprep.subr.bf16.mxu1 %v983_v10 }
 0x152   : > { %339 = vrot.lane.b32.xlu0 %v328_v9, %s1267_s26  ;;  %986 = vmatpush3.bf16.msra.mxu1 %v983_v10  ;;  %v423_v12 = vpop.f32.mrb[3].mxu1 }
 0x153   : > { %436 = vrot.lane.b32.xlu1 %v925_v11, %s1268_s29  ;;  %v987_v13 = vpack.c.bf16 %v925_v11, %v423_v12 }
 0x155   : > { %931 = vmatmul.mubr.msk.f32.vlgmr.msra.gmra.mrb[4].mxu1 %vm255_vm0, %v254_v4  ;;  %988 = vmatprep.subr.bf16.mxu1 %v987_v13 }
 0x156   : > { %990 = vmatpush3.bf16.msra.mxu1 %v987_v13  ;;  %937 = vmatprep.mubr.msk.f32.mxu1 %vm255_vm0, %v349_v5 }
 0x157   : > { %434 = vrot.lane.b32.xlu1 %v423_v12, %s1268_s29 }
 0x159   : > { %938 = vmatmul.mubr.msk.f32.vlgmr.msra.gmra.mrb[6].mxu1 %vm255_vm0, %v350_v6 }
 0x1c0   : > { %v342_v29 = vpop.permute.xlu0 %341 }
 0x1c1   : > { %347 = vst.msk [vmem:[#allocation2 + $0x8] sm:$0xff] %vm345_vm3, %v342_v29 }
 0x1c4   : > { %v340_v30 = vpop.permute.xlu0 %339 }
 0x1c5   : > { %346 = vst.msk [vmem:[#allocation2] sm:$0xff] %vm345_vm3, %v340_v30  ;;  %v437_v31 = vpop.permute.xlu1 %436 }
 0x1c6   : > { %442 = vst.msk [vmem:[#allocation2 + $0x8] sm:$0xff] %vm440_vm4, %v437_v31 }
 0x1c9   : > { %v435_v32 = vpop.permute.xlu1 %434 }
 0x1ca   : > { %441 = vst.msk [vmem:[#allocation2] sm:$0xff] %vm440_vm4, %v435_v32 }
 0x228   : > { %v932_v42 = vpop.f32.mrb[4].mxu1 }
 0x229   : > { %v527_v43 = vmul.f32 2.0, %v932_v42  ;;  %v517_v44 = vpop.f32.mrb[5].mxu1 }
 0x22a   : > { %v526_v45 = vmul.f32 2.0, %v517_v44 }
 0x22b   : > { %v529_v46 = vsub.f32 %v527_v43, %v1493_v1 }
 0x22c   : > { %v528_v47 = vsub.f32 %v526_v45, %v1491_v0  ;;  %v939_v48 = vpop.f32.mrb[6].mxu1 }
 0x22d   : > { %v625_v49 = vmul.f32 2.0, %v939_v48  ;;  %v615_v50 = vpop.f32.mrb[7].mxu1  ;;  %534 = vrot.lane.b32.xlu1 %v529_v46, %s1269_s6 }
 0x22e   : > { %v624_v51 = vmul.f32 2.0, %v615_v50  ;;  %532 = vrot.lane.b32.xlu0 %v528_v47, %s1269_s6 }
 0x22f   : > { %v627_v52 = vsub.f32 %v625_v49, %v1493_v1 }
 0x230   : > { %v626_v53 = vsub.f32 %v624_v51, %v1491_v0 }
 0x231   : > { %632 = vrot.lane.b32.xlu1 %v627_v52, %s1270_s22 }
 0x232   : > { %630 = vrot.lane.b32.xlu0 %v626_v53, %s1270_s22 }
 0x29f   : > { %v535_v54 = vpop.permute.xlu1 %534 }
 0x2a0   : > { %540 = vst.msk [vmem:[#allocation2 + $0x8] sm:$0xff] %vm538_vm5, %v535_v54  ;;  %v533_v55 = vpop.permute.xlu0 %532 }
 0x2a1   : > { %539 = vst.msk [vmem:[#allocation2] sm:$0xff] %vm538_vm5, %v533_v55 }
 0x2a3   : > { %v633_v56 = vpop.permute.xlu1 %632 }
 0x2a4   : > { %638 = vst.msk [vmem:[#allocation2 + $0x8] sm:$0xff] %vm636_vm6, %v633_v56  ;;  %v631_v57 = vpop.permute.xlu0 %630 }
 0x2a5   : > { %637 = vst.msk [vmem:[#allocation2] sm:$0xff] %vm636_vm6, %v631_v57 }
 0x2ab   : > { %v640_v59 = vld [vmem:[#allocation2 + $0x8] sm:$0xff] }
 0x2ac   : > { %v639_v58 = vld [vmem:[#allocation2] sm:$0xff] }
 0x2ad   : > { %972 = vmatprep.mubr.f32.mxu0 %v639_v58 }
 0x2ae   : > { %973 = vmatmul.mubr.f32.vlgmr.msra.gmra.mrb[0].mxu0 %v640_v59 }
 0x381   : > { %v974_v61 = vpop.f32.mrb[0].mxu0 }
 0x382   : > { %v736_v62 = vadd.f32 %v974_v61, %v870_v60  ;;  %v730_v63 = vpop.f32.mrb[1].mxu0 }
 0x383   : > { %v731_v0 = vadd.f32 %v870_v60, %v730_v63 }
 0x384   : > { %740 = vst [vmem:[%s244_s7 + $0x8] sm:$0xff] %v736_v62 }
 0x385   : > { %739 = vst [vmem:[%s244_s7] sm:$0xff] %v731_v0 }
 0x386   : > { %1198 = shalt.err (!%p1195_p13)
}
 0x387   : > { %s1199_s8 = scalar_lea.hbm %s1521_s9, 256  ;;  %s1203_s6 = scalar_lea.hbm %s1571_s4, 512 }
 0x388   : > { %p1200_p3 = scmp.ne.s32.totalorder %s1521_s9, %s1199_s8  ;;  %p1204_p7 = scmp.lt.u32.totalorder %s1521_s9, %s1571_s4 }
 0x389   : > { %p1205_p8 = scmp.lt.u32.totalorder %s1203_s6, %s1199_s8  ;;  %p1207_p10 = scmp.lt.u32.totalorder %s1199_s8, %s1521_s9 }
 0x38a   : > { %p1201_p11 = pnand %p1200_p3, %p1593_p1 }
 0x38b   : > { %p1206_p9 = por %p1205_p8, %p1204_p7 }
 0x38c   : > { %p1202_p0 = pneg %p1201_p11 }
 0x38d   : > { %p1208_p4 = por %p1207_p10, %p1206_p9 }
 0x38f   : > { %p1209_p2 = pnand %p1208_p4, %p1202_p0 }
 0x391   : > { %1212 = shalt.err (!%p1209_p2)
}
 0x392   : > { %s1272_s20 = smov 128   ;;  %s1273_s5 = smov 8  }
 0x393   : > { %1033 = dma.vmem_to_hbm [thread:$0]  (%p1593_p1), %s1516_s14, 256, %s1521_s9, %s1525_s10, %s1272_s20, %s1272_s20, %s1273_s5  }
 0x394 PF: > { %s770_s11 = sand.u32 1, %s1247_s15   ;;  %p1594_p6 = scmp.ne.s32.totalorder %s1580_s28, 0 }
 0x395   : > { %p1595_p5 = scmp.ge.s32.totalorder %s1259_s18, 2  ;;  %s771_s13 = scalar_lea.sflag [#allocation5], %s770_s11 }
 0x397   : > { %p1047_p12 = pnand %p1595_p5, %p1594_p6 }
 0x399   : > { %1242 = dma.done.wait (!%p1047_p12), %s771_s13, 256  }
 0x39a   : > { %1244 = vsyncadd (!%p1047_p12), %s771_s13, 4294967040  ;;  %p18_p13 = scmp.ge.s32.totalorder %s1324_s21, 4   ;;  %s1596_s15 = smov %s1251_s16 }
 0x39b   : > { %s1597_s16 = smov %s1255_s17  ;;  %s1598_s17 = smov %s1336_s24 }
 0x39c   : > { %s1599_s18 = smov %s1324_s21  ;;  %20 = sbr.rel (!%p18_p13) target bundleno = 6 (0x6), region = 91 }
 0x3a3   :  { %776 = vsyncpa [#allocation4], 1 }
 0x3a4   :  { %778 = vsyncpa [#allocation4 + $0x1], 1 }
 0x3a5   :  { %779 = vsyncpa [#allocation7], 1 }
 0x3a6   :  { %781 = vsyncpa [#allocation7 + $0x1], 1 }
 0x3a7   :  { %782 = vsyncpa [#allocation5], 1 }
 0x3a8   :  { %784 = vsyncpa [#allocation5 + $0x1], 1 }

</bundles_post_ra>
